<compile_context>
chip_gen: v7x
topology: tpu7x:2x2x1
jax: 0.10.0
libtpu: 0.0.40
codegen_flags: <defaults>
</compile_context>

<pallas_src>
import functools

import jax
import jax.numpy as jnp
from jax import lax
from jax.experimental import pallas as pl
from jax.experimental.pallas import tpu as pltpu

HIDDEN = 128


def _round_up(n: int, m: int) -> int:
    return ((n + m - 1) // m) * m


def value_network_kernel(x_ref, w1_ref, b1_ref, w2_ref, b2_ref, o_ref):
    # Layer 1: (tb, in) @ (in, 128) on the MXU, f32 accumulation regardless of
    # the streaming dtype of x / w1 (f32 or bf16).  Bias + ReLU on the VPU.
    h = jnp.dot(x_ref[...], w1_ref[...], preferred_element_type=jnp.float32)
    h = jnp.maximum(h + b1_ref[...], 0.0)

    # Layer 2: contract the hidden axis of w2 (1, 128) with h (tb, 128) on the
    # MXU -> lane-dense (1, tb) result (no XLU lane-reduce, no (tb, 1) column).
    v = lax.dot_general(
        w2_ref[...],
        h,
        dimension_numbers=(((1,), (1,)), ((), ())),
        preferred_element_type=jnp.float32,
    )

    # b2 is a scalar living in SMEM.  Output block is (1, 1, tb).
    o_ref[...] = (v + b2_ref[0])[None, :, :]


@functools.partial(jax.jit, static_argnames=("block_b",))
def value_network_forward(x, w1, b1, w2_row, b2, *, block_b: int = 1024):
    """x: (B, input_size) -> (B, 1); matches nn.Sequential(Linear, ReLU, Linear).

    x:      (B, input_size)   f32 or bf16 (bf16 halves HBM traffic at large B)
    w1:     (input_size, 128) pre-transposed first-layer weight (any float dtype)
    b1:     (1, 128)          first-layer bias (f32)
    w2_row: (1, 128)          second-layer weight stored as a lane-dense row (f32)
    b2:     (1,)              second-layer bias (scalar, kept in SMEM, f32)
    """
    B, in_features = x.shape

    # Keep both MXU operands in the streaming dtype (w1 is tiny; cast is free).
    w1 = w1.astype(x.dtype)

    # Sublane multiple: 8 for f32, 16 for 16-bit dtypes (sublane packing).
    sub = 16 if jnp.dtype(x.dtype).itemsize == 2 else 8

    # Single grid step for small/medium batches (latency path); big tiles with
    # >=2 grid steps for large B (throughput path; shards across v7x's 2 TCs).
    b_up = _round_up(B, sub)
    if b_up <= block_b:
        tb = b_up
    else:
        tb = _round_up(block_b, sub)
    num_tiles = pl.cdiv(B, tb)

    out = pl.pallas_call(
        value_network_kernel,
        grid=(num_tiles,),
        in_specs=[
            # x: tiled along batch; last block may read OOB rows (discarded).
            pl.BlockSpec((tb, in_features), lambda i: (i, 0)),
            # Weights / biases: same block every step -> resident in VMEM.
            pl.BlockSpec((in_features, HIDDEN), lambda i: (0, 0)),
            pl.BlockSpec((1, HIDDEN), lambda i: (0, 0)),
            pl.BlockSpec((1, HIDDEN), lambda i: (0, 0)),
            # b2: scalar in SMEM (no padded VMEM tile / extra DMA stream).
            pl.BlockSpec(memory_space=pltpu.MemorySpace.SMEM),
        ],
        # Lane-dense output: one (1, tb) row per grid step, stored as
        # (num_tiles, 1, tb) and flattened/sliced to (B, 1) in the wrapper.
        out_specs=pl.BlockSpec((1, 1, tb), lambda i: (i, 0, 0)),
        out_shape=jax.ShapeDtypeStruct((num_tiles, 1, tb), jnp.float32),
        compiler_params=pltpu.CompilerParams(
            dimension_semantics=("parallel",),
        ),
    )(x, w1, b1, w2_row, b2)

    # Tiny (B floats) reshape + slice; padded tail (from the ragged last x
    # block) is discarded here.
    return out.reshape(num_tiles * tb)[:B].reshape(B, 1)


def init_params(key, input_size: int, hidden: int = HIDDEN):
    """Deterministic init mirroring PyTorch defaults + uniform_init on the last layer."""
    k1, k2, k3, k4 = jax.random.split(key, 4)
    # nn.Linear default: U(-1/sqrt(fan_in), 1/sqrt(fan_in)) for weight and bias.
    bound1 = 1.0 / jnp.sqrt(jnp.float32(input_size))
    w1 = jax.random.uniform(k1, (input_size, hidden), jnp.float32, -bound1, bound1)
    b1 = jax.random.uniform(k2, (1, hidden), jnp.float32, -bound1, bound1)
    # uniform_init(layer, 0.003) on the final Linear(128, 1); stored as a (1,128) row.
    w2_row = jax.random.uniform(k3, (1, hidden), jnp.float32, -0.003, 0.003)
    b2 = jax.random.uniform(k4, (1,), jnp.float32, -0.003, 0.003)
    return w1, b1, w2_row, b2


def _reference(x, w1, b1, w2_row, b2):
    xf = x.astype(jnp.float32)
    w1f = w1.astype(jnp.float32)
    h = jnp.maximum(xf @ w1f + b1, 0.0)
    return h @ w2_row.T + b2[0]


if __name__ == "__main__":
    key = jax.random.PRNGKey(0)
    kx, kp, kx2 = jax.random.split(key, 3)

    B = 8            # batch (states per A2C update)
    INPUT_SIZE = 32  # state / feature dimension

    w1, b1, w2_row, b2 = init_params(kp, INPUT_SIZE, HIDDEN)

    # Small f32 batch: single grid step.
    x = jax.random.normal(kx, (B, INPUT_SIZE), jnp.float32)
    out = jax.block_until_ready(value_network_forward(x, w1, b1, w2_row, b2))
    ref = _reference(x, w1, b1, w2_row, b2)
    assert out.shape == (B, 1)
    assert jnp.allclose(out, ref, atol=1e-5, rtol=1e-5)

    # Larger, non-multiple batch: multi-step grid + ragged last block, no host pad.
    B2 = 300
    x2 = jax.random.normal(kx2, (B2, INPUT_SIZE), jnp.float32)
    out2 = jax.block_until_ready(
        value_network_forward(x2, w1, b1, w2_row, b2, block_b=128))
    ref2 = _reference(x2, w1, b1, w2_row, b2)
    assert out2.shape == (B2, 1)
    assert jnp.allclose(out2, ref2, atol=1e-5, rtol=1e-5)

    # bf16 streaming path: x and w1 in bf16, f32 MXU accumulation.
    x2_bf16 = x2.astype(jnp.bfloat16)
    w1_bf16 = w1.astype(jnp.bfloat16)
    out3 = jax.block_until_ready(
        value_network_forward(x2_bf16, w1_bf16, b1, w2_row, b2, block_b=128))
    ref3 = _reference(x2_bf16, w1_bf16, b1, w2_row, b2)
    assert out3.shape == (B2, 1)
    assert jnp.allclose(out3, ref3, atol=1e-4, rtol=1e-3)

    print("KERNEL_OK")
</pallas_src>

<mosaic_0001>
module attributes {stable_mosaic.version = 11 : i64} {
  func.func @value_network_kernel(%arg0: i32, %arg1: memref<8x32xf32, #tpu.memory_space<vmem>>, %arg2: memref<32x128xf32, #tpu.memory_space<vmem>>, %arg3: memref<1x128xf32, #tpu.memory_space<vmem>>, %arg4: memref<1x128xf32, #tpu.memory_space<vmem>>, %arg5: memref<1xf32, #tpu.memory_space<smem>>, %arg6: memref<1x1x8xf32, #tpu.memory_space<vmem>>) attributes {dimension_semantics = [#tpu.dimension_semantics<parallel>], iteration_bounds = array<i64: 1>, scalar_prefetch = 0 : i64, scratch_operands = 0 : i64, tpu.core_type = #tpu.core_type<tc>, window_params = [{transform_indices = @transform_0, window_bounds = array<i64: 8, 32>}, {pipeline_mode = #tpu.pipeline_mode<synchronous>, transform_indices = @transform_1, window_bounds = array<i64: 32, 128>}, {pipeline_mode = #tpu.pipeline_mode<synchronous>, transform_indices = @transform_2, window_bounds = array<i64: 1, 128>}, {pipeline_mode = #tpu.pipeline_mode<synchronous>, transform_indices = @transform_3, window_bounds = array<i64: 1, 128>}, {transform_indices = @transform_4, window_bounds = array<i64: 1>}, {transform_indices = @transform_5, window_bounds = array<i64: 1, 1, 8>}]} {
    %c0 = arith.constant 0 : index
    %c0_0 = arith.constant 0 : index
    %0 = vector.load %arg1[%c0, %c0_0] : memref<8x32xf32, #tpu.memory_space<vmem>>, vector<8x32xf32>
    %c0_1 = arith.constant 0 : index
    %c0_2 = arith.constant 0 : index
    %1 = vector.load %arg2[%c0_1, %c0_2] : memref<32x128xf32, #tpu.memory_space<vmem>>, vector<32x128xf32>
    %cst = arith.constant dense<0.000000e+00> : vector<8x128xf32>
    %2 = tpu.matmul %0, %1, %cst {dimension_numbers = #tpu.dot_dimension_numbers<[1], [0], [0], [1], [0, 0, 1, 1], [], []>} : vector<8x32xf32>, vector<32x128xf32>, vector<8x128xf32> -> vector<8x128xf32>
    %c0_3 = arith.constant 0 : index
    %c0_4 = arith.constant 0 : index
    %3 = vector.load %arg3[%c0_3, %c0_4] : memref<1x128xf32, #tpu.memory_space<vmem>>, vector<1x128xf32>
    %4 = vector.broadcast %3 : vector<1x128xf32> to vector<8x128xf32>
    %5 = arith.addf %2, %4 : vector<8x128xf32>
    %cst_5 = arith.constant 0.000000e+00 : f32
    %6 = vector.broadcast %cst_5 : f32 to vector<8x128xf32>
    %7 = arith.maximumf %5, %6 : vector<8x128xf32>
    %c0_6 = arith.constant 0 : index
    %c0_7 = arith.constant 0 : index
    %8 = vector.load %arg4[%c0_6, %c0_7] : memref<1x128xf32, #tpu.memory_space<vmem>>, vector<1x128xf32>
    %cst_8 = arith.constant dense<0.000000e+00> : vector<1x8xf32>
    %9 = tpu.matmul %8, %7, %cst_8 {dimension_numbers = #tpu.dot_dimension_numbers<[1], [1], [0], [0], [0, 0, 1, 0], [], []>} : vector<1x128xf32>, vector<8x128xf32>, vector<1x8xf32> -> vector<1x8xf32>
    %c0_9 = arith.constant 0 : index
    %10 = memref.load %arg5[%c0_9] : memref<1xf32, #tpu.memory_space<smem>>
    %11 = vector.broadcast %10 : f32 to vector<1x8xf32>
    %12 = arith.addf %9, %11 : vector<1x8xf32>
    %13 = vector.shape_cast %12 : vector<1x8xf32> to vector<1x1x8xf32>
    %c0_10 = arith.constant 0 : index
    %c0_11 = arith.constant 0 : index
    %c0_12 = arith.constant 0 : index
    %14 = vector.load %arg6[%c0_10, %c0_11, %c0_12] : memref<1x1x8xf32, #tpu.memory_space<vmem>>, vector<1x1x8xf32>
    tpu.vector_store %arg6[%c0_10, %c0_11, %c0_12], %13 {strides = array<i32>} : memref<1x1x8xf32, #tpu.memory_space<vmem>>, vector<1x1x8xf32>,
    return
  }
  func.func @transform_0(%arg0: i32) -> (i32, i32) {
    %c0_i32 = arith.constant 0 : i32
    %c0_i32_0 = arith.constant 0 : i32
    return %arg0, %c0_i32 : i32, i32
  }
  func.func @transform_1(%arg0: i32) -> (i32, i32) {
    %c0_i32 = arith.constant 0 : i32
    %c0_i32_0 = arith.constant 0 : i32
    %c0_i32_1 = arith.constant 0 : i32
    return %c0_i32, %c0_i32_0 : i32, i32
  }
  func.func @transform_2(%arg0: i32) -> (i32, i32) {
    %c0_i32 = arith.constant 0 : i32
    %c0_i32_0 = arith.constant 0 : i32
    %c0_i32_1 = arith.constant 0 : i32
    return %c0_i32, %c0_i32_0 : i32, i32
  }
  func.func @transform_3(%arg0: i32) -> (i32, i32) {
    %c0_i32 = arith.constant 0 : i32
    %c0_i32_0 = arith.constant 0 : i32
    %c0_i32_1 = arith.constant 0 : i32
    return %c0_i32, %c0_i32_0 : i32, i32
  }
  func.func @transform_4(%arg0: i32) -> i32 {
    %c0_i32 = arith.constant 0 : i32
    %c0_i32_0 = arith.constant 0 : i32
    return %c0_i32 : i32
  }
  func.func @transform_5(%arg0: i32) -> (i32, i32, i32) {
    %c0_i32 = arith.constant 0 : i32
    %c0_i32_0 = arith.constant 0 : i32
    %c0_i32_1 = arith.constant 0 : i32
    return %arg0, %c0_i32, %c0_i32_0 : i32, i32, i32
  }
}

</mosaic_0001>

<bundles_post_ra>
// kernel: value_network_forward.1
= control target key start
LH: loop header
LB: loop body
LE: loop exit
PB: predicated region body
PF: predicated region fallthrough
CT: control target
= control target key end

     0   :  { %11 = vsyncpa [#allocation4], 0  ;;  %s427_s0 = inlined_call_operand.hbm [shape: f32[8,32], index: 0, kind: input, shape index: {}]   ;;  %s428_s1 = inlined_call_operand.hbm [shape: f32[32,128], index: 1, kind: input, shape index: {}]   ;;  %s429_s2 = inlined_call_operand.vmem [shape: f32[1,128], index: 2, kind: input, shape index: {}]   ;;  %s430_s3 = inlined_call_operand.vmem [shape: f32[1,128], index: 3, kind: input, shape index: {}]   ;;  %s431_s4 = inlined_call_operand.<no memory space> [shape: f32[1], index: 4, kind: input, shape index: {}]   ;;  %s432_s5 = inlined_call_operand.hbm [shape: f32[1,1,8], index: 5, kind: output, shape index: {}]  }
   0x1   :  { %12 = vsyncpa [#allocation7], 0 }
   0x2   :  { %13 = vsyncpa [#allocation5], 0  ;;  %s337_s18 = smov [#allocation3]   ;;  %s338_s20 = smov [#allocation6]  }
   0x3   :  { %s20_s19 = sshll.u32 %s337_s18, 4  ;;  %s29_s21 = sshll.u32 %s338_s20, 4  ;;  %s21_s19 = int_to_ptr.vmem [resolvable:$true] %s20_s19  ;;  %s375_s21 = int_to_ptr.vmem [resolvable:$true] %s29_s21 }
   0x4   :  { %s265_s24 = scalar_lea.hbm %s427_s0, 128 }
   0x5   :  { %p266_p0 = scmp.ne.s32.totalorder %s427_s0, %s265_s24  ;;  %p269_p1 = scmp.lt.u32.totalorder %s265_s24, %s427_s0 }
   0x7   :  { %p271_p2 = pnand %p269_p1, %p266_p0 }
   0x9   :  { %274 = shalt.err (!%p271_p2)
}
   0xa   :  { %s275_s29 = scalar_lea.vmem %s21_s19, 128  ;;  %p280_p4 = scmp.lt.s32.totalorder %s21_s19, %s21_s19 }
   0xb   :  { %p276_p3 = scmp.ne.s32.totalorder %s21_s19, %s275_s29  ;;  %p281_p5 = scmp.lt.s32.totalorder %s275_s29, %s275_s29 }
   0xd   :  { %p282_p6 = por %p281_p5, %p280_p4 }
   0xf   :  { %p283_p7 = pnand %p282_p6, %p276_p3 }
  0x11   :  { %286 = shalt.err (!%p283_p7)
}
  0x12   :  { %23 = dma.hbm_to_vmem [thread:$0]  %s427_s0, 128, %s21_s19, [#allocation4]  }
  0x13   :  { %s287_s9 = scalar_lea.hbm %s428_s1, 512 }
  0x14   :  { %p288_p8 = scmp.ne.s32.totalorder %s428_s1, %s287_s9  ;;  %p291_p9 = scmp.lt.u32.totalorder %s287_s9, %s428_s1 }
  0x16   :  { %p293_p10 = pnand %p291_p9, %p288_p8 }
  0x18   :  { %296 = shalt.err (!%p293_p10)
}
  0x19   :  { %s297_s14 = scalar_lea.vmem %s375_s21, 512  ;;  %p302_p12 = scmp.lt.s32.totalorder %s375_s21, %s375_s21 }
  0x1a   :  { %p298_p11 = scmp.ne.s32.totalorder %s375_s21, %s297_s14  ;;  %p303_p13 = scmp.lt.s32.totalorder %s297_s14, %s297_s14 }
  0x1c   :  { %p304_p0 = por %p303_p13, %p302_p12 }
  0x1e   :  { %p305_p1 = pnand %p304_p0, %p298_p11 }
  0x20   :  { %308 = shalt.err (!%p305_p1)
}
  0x21   :  { %s339_s0 = smov 128   ;;  %s340_s15 = smov 8  }
  0x22   :  { %35 = dma.hbm_to_vmem [thread:$0]  %s428_s1, 512, %s375_s21, [#allocation7], %s339_s0, %s339_s0, %s340_s15  }
  0x23   :  { %331 = dma.done.wait [#allocation4], 128  }
  0x24   :  { %332 = vsyncadd [#allocation4], 4294967168 }
  0x25   :  { %333 = dma.done.wait [#allocation7], 512  }
  0x26   :  { %334 = vsyncadd [#allocation7], 4294966784  ;;  %v341_v0 = vmov 0.0|0.0   ;;  %vm342_vm0 = vmmov 0   ;;  %v343_v1 = vmov 0.0   ;;  %v49_v2 = vld [vmem:[#allocation6] sm:$0xff]  ;;  %v137_v15 = vstv %s431_s4 }
  0x27   :  { %251 = vmatprep.subr.bf16.mxu0 %v341_v0  ;;  %243 = vmatprep.mubr.msk.f32.mxu0 %vm342_vm0, %v343_v1  ;;  %v50_v3 = vld [vmem:[#allocation6 + $0x8] sm:$0xff]  ;;  %v51_v4 = vld [vmem:[#allocation6 + $0x10] sm:$0xff]  ;;  %v52_v6 = vld [vmem:[#allocation6 + $0x18] sm:$0xff]  ;;  %vm60_vm1 = vcmask 261120   ;;  %s344_s23 = smov [#allocation8]   ;;  %vm208_vm2 = vcmask 57344  }
  0x28   :  { %246 = vmatprep.subr.mxu1 %v343_v1  ;;  %248 = vmatprep.mubr.msk.f32.mxu1 %vm342_vm0, %v343_v1  ;;  %v252_v5 = vpack.c.bf16 %v50_v3, %v49_v2  ;;  %v255_v7 = vpack.c.bf16 %v52_v6, %v51_v4  ;;  %v48_v8 = vld [vmem:[#allocation3] sm:$0xff]  ;;  %s216_s24 = sshll.u32 %s344_s23, 4  ;;  %s217_s24 = int_to_ptr.vmem [resolvable:$true] %s216_s24 }
  0x29   :  { %v226_v9 = vld [vmem:[%s429_s2] ss:$0 sm:$0xff]  ;;  %s309_s2 = scalar_lea.vmem %s217_s24, 16  ;;  %s313_s25 = scalar_lea.vmem %s217_s24, 32 }
  0x2a   :  { %253 = vmatpush3.bf16.msra.mxu0 %v252_v5  ;;  %v135_v14 = vld [vmem:[%s430_s3] sm:$0x1]  ;;  %p310_p2 = scmp.ne.s32.totalorder %s217_s24, %s309_s2  ;;  %p314_p3 = scmp.lt.s32.totalorder %s217_s24, %s217_s24 }
  0x2b   :  { %254 = vmatprep.subr.bf16.mxu0 %v341_v0  ;;  %p315_p4 = scmp.lt.s32.totalorder %s313_s25, %s309_s2 }
  0x2d   :  { %p316_p5 = por %p315_p4, %p314_p3 }
  0x2e   :  { %256 = vmatpush3.bf16.msra.mxu0 %v255_v7 }
  0x2f   :  { %p317_p6 = pnand %p316_p5, %p310_p2 }
  0x31   :  { %244 = vmatmul.mubr.msk.f32.vlgmr.msra.gmra.mrb[0].mxu0 %vm60_vm1, %v48_v8 }
 0x104   :  { %v130_v10 = vpop.f32.mrb[0].mxu0 }
 0x105   :  { %v131_v11 = vadd.f32 %v226_v9, %v130_v10  ;;  %v245_v12 = vpop.f32.mrb[1].mxu0 }
 0x107   :  { %v134_v13 = vmax.f32 %v131_v11, 0.0 }
 0x109   :  { %247 = vmatpush3.xpose.msra.mxu1 %v134_v13 }
 0x10c   :  { %249 = vmatmul.mubr.f32.vlgmr.msra.gmra.mrb[0].mxu1 %v135_v14 }
 0x1df   :  { %v204_v16 = vpop.f32.mrb[0].mxu1 }
 0x1e0   :  { %v205_v17 = vadd.f32 %v204_v16, %v137_v15  ;;  %v250_v18 = vpop.f32.mrb[1].mxu1 }
 0x1e2   :  { %209 = vst.msk [vmem:[#allocation8] sm:$0x1] %vm208_vm2, %v205_v17 }
 0x1e3   :  { %320 = shalt.err (!%p317_p6)
}
 0x1e4   :  { %s321_s4 = scalar_lea.hbm %s432_s5, 16 }
 0x1e5   :  { %p322_p7 = scmp.ne.s32.totalorder %s432_s5, %s321_s4  ;;  %p325_p8 = scmp.lt.u32.totalorder %s321_s4, %s432_s5 }
 0x1e7   :  { %p327_p9 = pnand %p325_p8, %p322_p7 }
 0x1e9   :  { %330 = shalt.err (!%p327_p9)
}
 0x1ea   :  { %219 = dma.vmem_to_hbm [thread:$0]  %s217_s24, 16, %s432_s5, [#allocation5]  }
 0x1eb   :  { %335 = dma.done.wait [#allocation5], 16  }
 0x1ec   :  { %336 = vsyncadd [#allocation5], 4294967280 }
 0x1ed   :  { %223 = vsyncpa [#allocation4], 1 }
 0x1ee   :  { %224 = vsyncpa [#allocation7], 1 }
 0x1ef   :  { %225 = vsyncpa [#allocation5], 1 }

</bundles_post_ra>
